<compile_context>
chip_gen: v7x
topology: tpu7x:2x2x1
jax: 0.10.0
libtpu: 0.0.40
codegen_flags: <defaults>
</compile_context>

<pallas_src>
import jax
import jax.numpy as jnp
from jax.experimental import pallas as pl
from jax.experimental.pallas import tpu as pltpu


def _round_up(x, m):
    return ((x + m - 1) // m) * m


def _vmem_budgets():
    """Return (per-input block byte budget, vmem_limit_bytes) for this TPU."""
    vmem_cap = None
    try:
        info = pltpu.get_tpu_info()
        vmem_cap = getattr(info, "vmem_capacity_bytes", None)
    except Exception:
        vmem_cap = None
    if vmem_cap is None:
        vmem_cap = 64 * 1024 * 1024  # conservative: assume v7x-sized VMEM
    if vmem_cap >= 100 * 1024 * 1024:
        # v5e / v6e: 128 MiB physical VMEM -> 2 inputs x 2 buffers x 8 MiB = 32 MiB
        return 8 * 1024 * 1024, 64 * 1024 * 1024
    # v7x: 64 MiB physical VMEM -> 2 inputs x 2 buffers x 4 MiB = 16 MiB
    return 4 * 1024 * 1024, 40 * 1024 * 1024


def compute_iou(path_gt_imgs, path_pred_imgs):
    """Mean IoU over a batch of (target, prediction) mask pairs.

    Args:
      path_gt_imgs:   [N, H, W] targets in [0, 1]
      path_pred_imgs: [N, H, W] predictions in [0, 1]
    Returns:
      scalar float32 mean IoU (mean over the N images of tp / (tp + fn + fp))
    """
    assert path_gt_imgs.shape == path_pred_imgs.shape
    n, h, w = path_gt_imgs.shape
    hw = h * w
    elem_bytes = 4

    # Free (contiguous) reshape; only cast if not already f32 (no extra pass).
    gt = path_gt_imgs.reshape(n, hw)
    pred = path_pred_imgs.reshape(n, hw)
    if gt.dtype != jnp.float32:
        gt = gt.astype(jnp.float32)
    if pred.dtype != jnp.float32:
        pred = pred.astype(jnp.float32)

    block_budget, vmem_limit = _vmem_budgets()

    # ---- lane axis: balanced 128-aligned chunks (padding waste < 128 lanes) ----
    max_hw_tile = max(128, (block_budget // (8 * elem_bytes)) // 128 * 128)
    num_chunks = pl.cdiv(hw, max_hw_tile)
    hw_tile = _round_up(pl.cdiv(hw, num_chunks), 128)
    grid_hw = pl.cdiv(hw, hw_tile)
    needs_lane_mask = (hw % hw_tile) != 0   # static: skip masking when exact

    # ---- batch axis: fill the per-input VMEM byte budget (sublane multiple of 8) ----
    tb = max(8, (block_budget // (hw_tile * elem_bytes)) // 8 * 8)
    if n <= 8:
        tb = n                      # single block equal to the full batch dim
    else:
        tb = min(tb, _round_up(n, 8))
    grid_n = pl.cdiv(n, tb)
    n_pad = grid_n * tb

    def _iou_kernel(gt_ref, pred_ref, iou_ref, tp_acc, tso_acc):
        hj = pl.program_id(1)                 # intra-image chunk (reduction, last axis)
        last_hw = pl.num_programs(1) - 1

        @pl.when(hj == 0)
        def _():
            tp_acc[...] = jnp.zeros_like(tp_acc)
            tso_acc[...] = jnp.zeros_like(tso_acc)

        t = gt_ref[...]                       # (tb, hw_tile) f32
        o = pred_ref[...]
        if needs_lane_mask:
            # Edge-block lanes beyond hw hold garbage (no wrapper padding) ->
            # zero them before any arithmetic. Pure VPU work, free under DMA.
            lane = jax.lax.broadcasted_iota(jnp.int32, (tb, hw_tile), 1)
            valid = (hj * hw_tile + lane) < hw
            zero = jnp.float32(0.0)
            t = jnp.where(valid, t, zero)
            o = jnp.where(valid, o, zero)

        # Two reductions per chunk: sum(t*o) and sum(t)+sum(o).
        tp_acc[...] += jnp.sum(t * o, axis=1, keepdims=True)
        tso_acc[...] += jnp.sum(t + o, axis=1, keepdims=True)

        @pl.when(hj == last_hw)
        def _():
            tp = tp_acc[...]                  # (tb, 1)
            denom = tso_acc[...] - tp         # sum(t)+sum(o)-tp == tp+fn+fp
            iou_ref[...] = tp / denom         # NaN on 0/0, matching the reference

    per_image_iou = pl.pallas_call(
        _iou_kernel,
        out_shape=jax.ShapeDtypeStruct((n_pad, 1), jnp.float32),
        grid_spec=pltpu.PrefetchScalarGridSpec(
            num_scalar_prefetch=0,
            grid=(grid_n, grid_hw),
            in_specs=[
                pl.BlockSpec((tb, hw_tile), lambda i, j: (i, j)),
                pl.BlockSpec((tb, hw_tile), lambda i, j: (i, j)),
            ],
            out_specs=pl.BlockSpec((tb, 1), lambda i, j: (i, 0)),
            scratch_shapes=[
                pltpu.VMEM((tb, 1), jnp.float32),   # per-image tp partials
                pltpu.VMEM((tb, 1), jnp.float32),   # per-image sum(t)+sum(o) partials
            ],
        ),
        compiler_params=pltpu.CompilerParams(
            # Batch blocks are independent (parallel -> both v7x TCs);
            # intra-image chunk axis is a serial reduction into scratch.
            dimension_semantics=("parallel", "arbitrary"),
            vmem_limit_bytes=vmem_limit,
        ),
    )(gt, pred)

    # Drop batch-padding rows (garbage, never read from HBM beyond the array)
    # and take the mean — tiny O(N) work in the wrapper.
    return jnp.mean(per_image_iou[:n, 0])


def _reference_iou(gt, pred):
    # Mirrors the original numpy formula (tp / (tp + fn + fp), mean over images).
    ious = []
    for t, o in zip(gt, pred):
        tp = jnp.sum(t * o)
        fn = jnp.sum(o * (1.0 - t))
        fp = jnp.sum((1.0 - o) * t)
        ious.append(tp / (tp + fn + fp))
    return jnp.mean(jnp.stack(ious))


if __name__ == "__main__":
    key = jax.random.PRNGKey(0)
    k_gt, k_pred = jax.random.split(key)

    N, H, W = 4, 16, 16
    # Simulate "imread(...)/255.0"-style masks in [0, 1].
    path_gt = (jax.random.uniform(k_gt, (N, H, W)) > 0.5).astype(jnp.float32)
    path_pred = jax.random.uniform(k_pred, (N, H, W)).astype(jnp.float32)

    iou_mean = compute_iou(path_gt, path_pred)
    jax.block_until_ready(iou_mean)

    ref = _reference_iou(path_gt, path_pred)
    assert jnp.allclose(iou_mean, ref, rtol=1e-4, atol=1e-6), (iou_mean, ref)

    print("KERNEL_OK")
</pallas_src>

<mosaic_0001>
module attributes {stable_mosaic.version = 11 : i64} {
  func.func @_iou_kernel(%arg0: i32, %arg1: i32, %arg2: memref<4x256xf32, #tpu.memory_space<vmem>>, %arg3: memref<4x256xf32, #tpu.memory_space<vmem>>, %arg4: memref<4x1xf32, #tpu.memory_space<vmem>>, %arg5: memref<4x1xf32, #tpu.memory_space<vmem>>, %arg6: memref<4x1xf32, #tpu.memory_space<vmem>>) attributes {dimension_semantics = [#tpu.dimension_semantics<parallel>, #tpu.dimension_semantics<arbitrary>], iteration_bounds = array<i64: 1, 1>, scalar_prefetch = 0 : i64, scratch_operands = 2 : i64, tpu.core_type = #tpu.core_type<tc>, window_params = [{transform_indices = @transform_0, window_bounds = array<i64: 4, 256>}, {transform_indices = @transform_1, window_bounds = array<i64: 4, 256>}, {transform_indices = @transform_2, window_bounds = array<i64: 4, 1>}]} {
    %c0_i32 = arith.constant 0 : i32
    %0 = arith.cmpi eq, %arg1, %c0_i32 : i32
    %1 = arith.extui %0 : i1 to i32
    %c0_i32_0 = arith.constant 0 : i32
    %2 = arith.cmpi ne, %1, %c0_i32_0 : i32
    scf.if %2 {
      %cst_15 = arith.constant 0.000000e+00 : f32
      %20 = vector.broadcast %cst_15 : f32 to vector<4x1xf32>
      %c0_16 = arith.constant 0 : index
      %c0_17 = arith.constant 0 : index
      %21 = vector.load %arg5[%c0_16, %c0_17] : memref<4x1xf32, #tpu.memory_space<vmem>>, vector<4x1xf32>
      tpu.vector_store %arg5[%c0_16, %c0_17], %20 {strides = array<i32>} : memref<4x1xf32, #tpu.memory_space<vmem>>, vector<4x1xf32>,
      %cst_18 = arith.constant 0.000000e+00 : f32
      %22 = vector.broadcast %cst_18 : f32 to vector<4x1xf32>
      %c0_19 = arith.constant 0 : index
      %c0_20 = arith.constant 0 : index
      %23 = vector.load %arg6[%c0_19, %c0_20] : memref<4x1xf32, #tpu.memory_space<vmem>>, vector<4x1xf32>
      tpu.vector_store %arg6[%c0_19, %c0_20], %22 {strides = array<i32>} : memref<4x1xf32, #tpu.memory_space<vmem>>, vector<4x1xf32>,
    } else {
    }
    %c0 = arith.constant 0 : index
    %c0_1 = arith.constant 0 : index
    %3 = vector.load %arg2[%c0, %c0_1] : memref<4x256xf32, #tpu.memory_space<vmem>>, vector<4x256xf32>
    %c0_2 = arith.constant 0 : index
    %c0_3 = arith.constant 0 : index
    %4 = vector.load %arg3[%c0_2, %c0_3] : memref<4x256xf32, #tpu.memory_space<vmem>>, vector<4x256xf32>
    %c0_4 = arith.constant 0 : index
    %c0_5 = arith.constant 0 : index
    %5 = vector.load %arg5[%c0_4, %c0_5] : memref<4x1xf32, #tpu.memory_space<vmem>>, vector<4x1xf32>
    %6 = arith.mulf %3, %4 : vector<4x256xf32>
    %cst = arith.constant dense<0.000000e+00> : vector<4xf32>
    %7 = vector.multi_reduction <add>, %6, %cst [1] : vector<4x256xf32> to vector<4xf32>
    %8 = vector.shape_cast %7 : vector<4xf32> to vector<4x1xf32>
    %9 = arith.addf %5, %8 : vector<4x1xf32>
    %c0_6 = arith.constant 0 : index
    %c0_7 = arith.constant 0 : index
    %10 = vector.load %arg5[%c0_6, %c0_7] : memref<4x1xf32, #tpu.memory_space<vmem>>, vector<4x1xf32>
    tpu.vector_store %arg5[%c0_6, %c0_7], %9 {strides = array<i32>} : memref<4x1xf32, #tpu.memory_space<vmem>>, vector<4x1xf32>,
    %c0_8 = arith.constant 0 : index
    %c0_9 = arith.constant 0 : index
    %11 = vector.load %arg6[%c0_8, %c0_9] : memref<4x1xf32, #tpu.memory_space<vmem>>, vector<4x1xf32>
    %12 = arith.addf %3, %4 : vector<4x256xf32>
    %cst_10 = arith.constant dense<0.000000e+00> : vector<4xf32>
    %13 = vector.multi_reduction <add>, %12, %cst_10 [1] : vector<4x256xf32> to vector<4xf32>
    %14 = vector.shape_cast %13 : vector<4xf32> to vector<4x1xf32>
    %15 = arith.addf %11, %14 : vector<4x1xf32>
    %c0_11 = arith.constant 0 : index
    %c0_12 = arith.constant 0 : index
    %16 = vector.load %arg6[%c0_11, %c0_12] : memref<4x1xf32, #tpu.memory_space<vmem>>, vector<4x1xf32>
    tpu.vector_store %arg6[%c0_11, %c0_12], %15 {strides = array<i32>} : memref<4x1xf32, #tpu.memory_space<vmem>>, vector<4x1xf32>,
    %c0_i32_13 = arith.constant 0 : i32
    %17 = arith.cmpi eq, %arg1, %c0_i32_13 : i32
    %18 = arith.extui %17 : i1 to i32
    %c0_i32_14 = arith.constant 0 : i32
    %19 = arith.cmpi ne, %18, %c0_i32_14 : i32
    scf.if %19 {
      %c0_15 = arith.constant 0 : index
      %c0_16 = arith.constant 0 : index
      %20 = vector.load %arg5[%c0_15, %c0_16] : memref<4x1xf32, #tpu.memory_space<vmem>>, vector<4x1xf32>
      %c0_17 = arith.constant 0 : index
      %c0_18 = arith.constant 0 : index
      %21 = vector.load %arg6[%c0_17, %c0_18] : memref<4x1xf32, #tpu.memory_space<vmem>>, vector<4x1xf32>
      %22 = arith.subf %21, %20 : vector<4x1xf32>
      %23 = arith.divf %20, %22 : vector<4x1xf32>
      %c0_19 = arith.constant 0 : index
      %c0_20 = arith.constant 0 : index
      %24 = vector.load %arg4[%c0_19, %c0_20] : memref<4x1xf32, #tpu.memory_space<vmem>>, vector<4x1xf32>
      tpu.vector_store %arg4[%c0_19, %c0_20], %23 {strides = array<i32>} : memref<4x1xf32, #tpu.memory_space<vmem>>, vector<4x1xf32>,
    } else {
    }
    return
  }
  func.func @transform_0(%arg0: i32, %arg1: i32) -> (i32, i32) {
    %c0_i32 = arith.constant 0 : i32
    return %arg0, %arg1 : i32, i32
  }
  func.func @transform_1(%arg0: i32, %arg1: i32) -> (i32, i32) {
    %c0_i32 = arith.constant 0 : i32
    return %arg0, %arg1 : i32, i32
  }
  func.func @transform_2(%arg0: i32, %arg1: i32) -> (i32, i32) {
    %c0_i32 = arith.constant 0 : i32
    %c0_i32_0 = arith.constant 0 : i32
    return %arg0, %c0_i32 : i32, i32
  }
}

</mosaic_0001>

<bundles_post_ra>
// kernel: tpu_custom_call.1
= control target key start
LH: loop header
LB: loop body
LE: loop exit
PB: predicated region body
PF: predicated region fallthrough
CT: control target
= control target key end

     0   :  { %7 = vsyncpa [#allocation5], 0  ;;  %s188_s0 = inlined_call_operand.hbm [shape: f32[4,256], index: 0, kind: input, shape index: {}]   ;;  %s189_s1 = inlined_call_operand.hbm [shape: f32[4,256], index: 1, kind: input, shape index: {}]   ;;  %s190_s2 = inlined_call_operand.vmem [shape: f32[4,1], index: 2, kind: output, shape index: {}]  }
   0x1   :  { %8 = vsyncpa [#allocation7], 0  ;;  %s138_s9 = smov [#allocation4]   ;;  %s139_s11 = smov [#allocation6]  }
   0x2   :  { %s15_s10 = sshll.u32 %s138_s9, 4  ;;  %s25_s12 = sshll.u32 %s139_s11, 4  ;;  %s16_s10 = int_to_ptr.vmem [resolvable:$true] %s15_s10  ;;  %s26_s12 = int_to_ptr.vmem [resolvable:$true] %s25_s12 }
   0x3   :  { %s90_s15 = scalar_lea.hbm %s188_s0, 128 }
   0x4   :  { %p91_p0 = scmp.ne.s32.totalorder %s188_s0, %s90_s15  ;;  %p94_p1 = scmp.lt.u32.totalorder %s90_s15, %s188_s0 }
   0x6   :  { %p96_p2 = pnand %p94_p1, %p91_p0 }
   0x8   :  { %99 = shalt.err (!%p96_p2)
}
   0x9   :  { %s100_s20 = scalar_lea.vmem %s16_s10, 128  ;;  %p105_p4 = scmp.lt.s32.totalorder %s16_s10, %s16_s10 }
   0xa   :  { %p101_p3 = scmp.ne.s32.totalorder %s16_s10, %s100_s20  ;;  %p106_p5 = scmp.lt.s32.totalorder %s100_s20, %s100_s20 }
   0xc   :  { %p107_p6 = por %p106_p5, %p105_p4 }
   0xe   :  { %p108_p7 = pnand %p107_p6, %p101_p3 }
  0x10   :  { %111 = shalt.err (!%p108_p7)
}
  0x11   :  { %18 = dma.hbm_to_vmem [thread:$0]  %s188_s0, 128, %s16_s10, [#allocation5]  }
  0x12   :  { %s112_s25 = scalar_lea.hbm %s189_s1, 128 }
  0x13   :  { %p113_p8 = scmp.ne.s32.totalorder %s189_s1, %s112_s25  ;;  %p116_p9 = scmp.lt.u32.totalorder %s112_s25, %s189_s1 }
  0x15   :  { %p118_p10 = pnand %p116_p9, %p113_p8 }
  0x17   :  { %121 = shalt.err (!%p118_p10)
}
  0x18   :  { %s122_s30 = scalar_lea.vmem %s26_s12, 128  ;;  %p127_p12 = scmp.lt.s32.totalorder %s26_s12, %s26_s12 }
  0x19   :  { %p123_p11 = scmp.ne.s32.totalorder %s26_s12, %s122_s30  ;;  %p128_p13 = scmp.lt.s32.totalorder %s122_s30, %s122_s30 }
  0x1b   :  { %p129_p0 = por %p128_p13, %p127_p12 }
  0x1d   :  { %p130_p1 = pnand %p129_p0, %p123_p11 }
  0x1f   :  { %133 = shalt.err (!%p130_p1)
}
  0x20   :  { %28 = dma.hbm_to_vmem [thread:$0]  %s189_s1, 128, %s26_s12, [#allocation7]  }
  0x21   :  { %134 = dma.done.wait [#allocation5], 128  }
  0x22   :  { %135 = vsyncadd [#allocation5], 4294967168 }
  0x23   :  { %136 = dma.done.wait [#allocation7], 128  }
  0x24   :  { %137 = vsyncadd [#allocation7], 4294967168  ;;  %vm39_vm0 = vcmask 3072   ;;  %v140_v0 = vmov 0.0   ;;  %v42_v1 = vld [vmem:[#allocation4] sm:$0xff]  ;;  %v43_v2 = vld [vmem:[#allocation6] sm:$0xff] }
  0x25   :  { %40 = vst.msk [vmem:[#allocation2] sm:$0xf] %vm39_vm0, %v140_v0  ;;  %41 = vst.msk [vmem:[#allocation3] sm:$0xf] %vm39_vm0, %v140_v0  ;;  %vm49_vm1 = vcmask 1043456   ;;  %v45_v3 = vmul.f32 %v43_v2, %v42_v1  ;;  %v59_v4 = vadd.f32 %v43_v2, %v42_v1 }
  0x27   :  { %v47_v5 = vcombine.high %v45_v3, %v45_v3  ;;  %v50_v6 = vsel %vm49_vm1, %v45_v3, 0.0  ;;  %v61_v7 = vcombine.high %v59_v4, %v59_v4  ;;  %v63_v9 = vsel %vm49_vm1, %v59_v4, 0.0 }
  0x29   :  { %v51_v8 = vsel %vm49_vm1, %v47_v5, 0.0  ;;  %v64_v10 = vsel %vm49_vm1, %v61_v7, 0.0 }
  0x2a   :  { %v52_v11 = vadd.f32 %v51_v8, %v50_v6  ;;  %v65_v12 = vadd.f32 %v64_v10, %v63_v9 }
  0x2c   :  { %53 = vadd.xlane.f32.xlu0 %v52_v11  ;;  %v44_v13 = vld [vmem:[#allocation2] sm:$0xf]  ;;  %v58_v16 = vld [vmem:[#allocation3] sm:$0xf] }
  0x30   :  { %66 = vadd.xlane.f32.xlu0 %v65_v12 }
  0xb9   :  { %v54_v14 = vpop.xlane.xlu0 %53 }
  0xba   :  { %v55_v15 = vadd.f32 %v54_v14, %v44_v13 }
  0xbc   :  { %57 = vst.msk [vmem:[#allocation2] sm:$0xf] %vm39_vm0, %v55_v15 }
  0xbd   :  { %v67_v17 = vpop.xlane.xlu0 %66 }
  0xbe   :  { %v68_v18 = vadd.f32 %v67_v17, %v58_v16 }
  0xc0   :  { %69 = vst.msk [vmem:[#allocation3] sm:$0xf] %vm39_vm0, %v68_v18 }
  0xc3   :  { %v73_v19 = vld [vmem:[#allocation2] sm:$0xf] }
  0xc7   :  { %v74_v20 = vld [vmem:[#allocation3] sm:$0xf] }
  0xc8   :  { %v75_v21 = vsub.f32 %v74_v20, %v73_v19 }
  0xca   :  { %88 = vrcp.f32 %v75_v21 }
  0xd4   :  { %v89_v22 = vpop.eup %88 }
  0xd5   :  { %v77_v23 = vmul.f32 %v89_v22, %v73_v19 }
  0xd7   :  { %78 = vst.msk [vmem:[%s190_s2] sm:$0xf] %vm39_vm0, %v77_v23 }
  0xd8   :  { %83 = vsyncpa [#allocation5], 1 }
  0xd9   :  { %84 = vsyncpa [#allocation7], 1 }

</bundles_post_ra>
